<compile_context>
chip_gen: v5e
topology: v5e:2x2
jax: 0.10.0
libtpu: 0.0.40
codegen_flags: <defaults>
</compile_context>

<pallas_src>
import functools

import jax
import jax.numpy as jnp
from jax.experimental import pallas as pl
from jax.experimental.pallas import tpu as pltpu

HIDDEN = 64        # hidden width of the PyTorch module
HIDDEN_PAD = 128   # lane-dense padded hidden width (padded units are exact zeros)


def _round_up(x, m):
    return ((x + m - 1) // m) * m


def critic_kernel(x_ref, w1_ref, b1_ref, w2_ref, b2_ref, w3_ref, b3_ref, o_ref):
    # bf16 operands into the MXU, f32 accumulation; bias/ReLU in f32 on the VPU.
    x = x_ref[...].astype(jnp.bfloat16)                               # (TB, D_in)

    z = jnp.dot(x, w1_ref[...], preferred_element_type=jnp.float32)   # (TB, 128)
    z = jnp.maximum(z + b1_ref[...], 0.0)

    z = jnp.dot(z.astype(jnp.bfloat16), w2_ref[...],
                preferred_element_type=jnp.float32)                   # (TB, 128)
    z = jnp.maximum(z + b2_ref[...], 0.0)

    z = jnp.dot(z.astype(jnp.bfloat16), w3_ref[...],
                preferred_element_type=jnp.float32)                   # (TB, N3pad)
    o_ref[...] = (z + b3_ref[...]).astype(o_ref.dtype)                # lane-dense store


def prepare_critic_params(w1, b1, w2, b2, w3, b3):
    """One-time conversion to the kernel layout: weights (in,out) bf16, zero-padded
    to lane-dense widths. Padding is exact: padded hidden units have zero weight
    and zero bias, ReLU(0)=0, so they contribute nothing downstream."""
    d_in = w1.shape[0]
    d_out = w3.shape[1]
    n3 = _round_up(d_out, 128)
    bf = jnp.bfloat16

    w1p = jnp.zeros((d_in, HIDDEN_PAD), bf).at[:, :HIDDEN].set(w1.astype(bf))
    b1p = jnp.zeros((1, HIDDEN_PAD), jnp.float32).at[:, :HIDDEN].set(b1)
    w2p = jnp.zeros((HIDDEN_PAD, HIDDEN_PAD), bf).at[:HIDDEN, :HIDDEN].set(w2.astype(bf))
    b2p = jnp.zeros((1, HIDDEN_PAD), jnp.float32).at[:, :HIDDEN].set(b2)
    w3p = jnp.zeros((HIDDEN_PAD, n3), bf).at[:HIDDEN, :d_out].set(w3.astype(bf))
    b3p = jnp.zeros((1, n3), jnp.float32).at[:, :d_out].set(b3)
    return (w1p, b1p, w2p, b2p, w3p, b3p), d_out


@functools.partial(jax.jit, static_argnames=("d_out", "block_batch"))
def critic_forward(x, params, *, d_out, block_batch=512):
    """Fused CriticNetwork forward. x: (B, D_in) f32 -> (B, d_out) f32."""
    w1, b1, w2, b2, w3, b3 = params
    B, d_in = x.shape
    n3 = w3.shape[1]

    # Batch tile: multiple of 8 (sublane rule); a few hundred rows is plenty and
    # stays far below v7x's 64 MiB VMEM even with double buffering.
    tb = min(block_batch, _round_up(B, 8))
    grid = (pl.cdiv(B, tb),)

    flops = 2 * B * (d_in * HIDDEN_PAD + HIDDEN_PAD * HIDDEN_PAD + HIDDEN_PAD * n3)
    bytes_accessed = (x.size * 4
                      + (w1.size + w2.size + w3.size) * 2      # bf16 weights
                      + (b1.size + b2.size + b3.size) * 4      # f32 biases
                      + B * n3 * 4)                            # f32 output

    out_padded = pl.pallas_call(
        critic_kernel,
        out_shape=jax.ShapeDtypeStruct((B, n3), jnp.float32),
        grid=grid,
        in_specs=[
            # x tile marches over the batch; last dim = full D_in (legal: equals array dim).
            pl.BlockSpec((tb, d_in), lambda i: (i, 0)),
            # Weights / biases: constant index_map -> VMEM-resident across all tiles.
            pl.BlockSpec(w1.shape, lambda i: (0, 0)),
            pl.BlockSpec(b1.shape, lambda i: (0, 0)),
            pl.BlockSpec(w2.shape, lambda i: (0, 0)),
            pl.BlockSpec(b2.shape, lambda i: (0, 0)),
            pl.BlockSpec(w3.shape, lambda i: (0, 0)),
            pl.BlockSpec(b3.shape, lambda i: (0, 0)),
        ],
        out_specs=pl.BlockSpec((tb, n3), lambda i: (i, 0)),
        compiler_params=pltpu.CompilerParams(
            dimension_semantics=("parallel",)),   # megacore sharding on v7x
        cost_estimate=pl.CostEstimate(
            flops=flops, transcendentals=0, bytes_accessed=bytes_accessed),
    )(x, w1, b1, w2, b2, w3, b3)

    # Drop the lane-padding columns of the final projection.
    return out_padded[:, :d_out]


def init_linear_params(key, fan_in, fan_out):
    """Mimics torch.nn.Linear default init (uniform +/- 1/sqrt(fan_in)).
    Weight returned as (fan_in, fan_out) so the kernel computes x @ W."""
    kw, kb = jax.random.split(key)
    bound = 1.0 / jnp.sqrt(jnp.float32(fan_in))
    w = jax.random.uniform(kw, (fan_in, fan_out), jnp.float32, -bound, bound)
    b = jax.random.uniform(kb, (1, fan_out), jnp.float32, -bound, bound)
    return w, b


if __name__ == "__main__":
    input_dim = 32     # observation dim
    output_dim = 1     # critic value
    batch = 8          # small demo batch; real RL batches should be stacked/vmapped
                       # before calling (at B=8 the call is launch-overhead-bound).

    key = jax.random.PRNGKey(0)
    k_x, k1, k2, k3 = jax.random.split(key, 4)

    x = jax.random.normal(k_x, (batch, input_dim), jnp.float32)
    w1, b1 = init_linear_params(k1, input_dim, HIDDEN)
    w2, b2 = init_linear_params(k2, HIDDEN, HIDDEN)
    w3, b3 = init_linear_params(k3, HIDDEN, output_dim)

    params, d_out = prepare_critic_params(w1, b1, w2, b2, w3, b3)
    out = critic_forward(x, params, d_out=d_out)
    out = jax.block_until_ready(out)
    assert out.shape == (batch, output_dim)

    # 1) Module-semantics reference in f32 (loose tolerance: kernel matmuls use
    #    bf16 operands with f32 accumulation).
    ref32 = jnp.maximum(x @ w1 + b1, 0.0)
    ref32 = jnp.maximum(ref32 @ w2 + b2, 0.0)
    ref32 = ref32 @ w3 + b3
    assert jnp.allclose(out, ref32, atol=5e-2, rtol=5e-2), "mismatch vs f32 reference"

    # 2) Precision-matched reference (same bf16 casts as the kernel) -> tight check.
    bf = jnp.bfloat16
    rbf = jnp.maximum(jnp.dot(x.astype(bf), w1.astype(bf),
                              preferred_element_type=jnp.float32) + b1, 0.0)
    rbf = jnp.maximum(jnp.dot(rbf.astype(bf), w2.astype(bf),
                              preferred_element_type=jnp.float32) + b2, 0.0)
    rbf = jnp.dot(rbf.astype(bf), w3.astype(bf),
                  preferred_element_type=jnp.float32) + b3
    assert jnp.allclose(out, rbf, atol=5e-3, rtol=5e-3), "mismatch vs bf16 reference"

    print("KERNEL_OK")
</pallas_src>

<mosaic_0001>
module attributes {stable_mosaic.version = 11 : i64} {
  func.func @critic_kernel(%arg0: i32, %arg1: memref<8x32xf32, #tpu.memory_space<vmem>>, %arg2: memref<32x128xbf16, #tpu.memory_space<vmem>>, %arg3: memref<1x128xf32, #tpu.memory_space<vmem>>, %arg4: memref<128x128xbf16, #tpu.memory_space<vmem>>, %arg5: memref<1x128xf32, #tpu.memory_space<vmem>>, %arg6: memref<128x128xbf16, #tpu.memory_space<vmem>>, %arg7: memref<1x128xf32, #tpu.memory_space<vmem>>, %arg8: memref<8x128xf32, #tpu.memory_space<vmem>>) attributes {dimension_semantics = [#tpu.dimension_semantics<parallel>], iteration_bounds = array<i64: 1>, scalar_prefetch = 0 : i64, scratch_operands = 0 : i64, tpu.core_type = #tpu.core_type<tc>, window_params = [{transform_indices = @transform_0, window_bounds = array<i64: 8, 32>}, {pipeline_mode = #tpu.pipeline_mode<synchronous>, transform_indices = @transform_1, window_bounds = array<i64: 32, 128>}, {pipeline_mode = #tpu.pipeline_mode<synchronous>, transform_indices = @transform_2, window_bounds = array<i64: 1, 128>}, {pipeline_mode = #tpu.pipeline_mode<synchronous>, transform_indices = @transform_3, window_bounds = array<i64: 128, 128>}, {pipeline_mode = #tpu.pipeline_mode<synchronous>, transform_indices = @transform_4, window_bounds = array<i64: 1, 128>}, {pipeline_mode = #tpu.pipeline_mode<synchronous>, transform_indices = @transform_5, window_bounds = array<i64: 128, 128>}, {pipeline_mode = #tpu.pipeline_mode<synchronous>, transform_indices = @transform_6, window_bounds = array<i64: 1, 128>}, {transform_indices = @transform_7, window_bounds = array<i64: 8, 128>}]} {
    %c0 = arith.constant 0 : index
    %c0_0 = arith.constant 0 : index
    %0 = vector.load %arg1[%c0, %c0_0] : memref<8x32xf32, #tpu.memory_space<vmem>>, vector<8x32xf32>
    %1 = arith.truncf %0 : vector<8x32xf32> to vector<8x32xbf16>
    %c0_1 = arith.constant 0 : index
    %c0_2 = arith.constant 0 : index
    %2 = vector.load %arg2[%c0_1, %c0_2] : memref<32x128xbf16, #tpu.memory_space<vmem>>, vector<32x128xbf16>
    %cst = arith.constant dense<0.000000e+00> : vector<8x128xf32>
    %3 = tpu.matmul %1, %2, %cst {dimension_numbers = #tpu.dot_dimension_numbers<[1], [0], [0], [1], [0, 0, 1, 1], [], []>} : vector<8x32xbf16>, vector<32x128xbf16>, vector<8x128xf32> -> vector<8x128xf32>
    %c0_3 = arith.constant 0 : index
    %c0_4 = arith.constant 0 : index
    %4 = vector.load %arg3[%c0_3, %c0_4] : memref<1x128xf32, #tpu.memory_space<vmem>>, vector<1x128xf32>
    %5 = vector.broadcast %4 : vector<1x128xf32> to vector<8x128xf32>
    %6 = arith.addf %3, %5 : vector<8x128xf32>
    %cst_5 = arith.constant 0.000000e+00 : f32
    %7 = vector.broadcast %cst_5 : f32 to vector<8x128xf32>
    %8 = arith.maximumf %6, %7 : vector<8x128xf32>
    %9 = arith.truncf %8 : vector<8x128xf32> to vector<8x128xbf16>
    %c0_6 = arith.constant 0 : index
    %c0_7 = arith.constant 0 : index
    %10 = vector.load %arg4[%c0_6, %c0_7] : memref<128x128xbf16, #tpu.memory_space<vmem>>, vector<128x128xbf16>
    %cst_8 = arith.constant dense<0.000000e+00> : vector<8x128xf32>
    %11 = tpu.matmul %9, %10, %cst_8 {dimension_numbers = #tpu.dot_dimension_numbers<[1], [0], [0], [1], [0, 0, 1, 1], [], []>} : vector<8x128xbf16>, vector<128x128xbf16>, vector<8x128xf32> -> vector<8x128xf32>
    %c0_9 = arith.constant 0 : index
    %c0_10 = arith.constant 0 : index
    %12 = vector.load %arg5[%c0_9, %c0_10] : memref<1x128xf32, #tpu.memory_space<vmem>>, vector<1x128xf32>
    %13 = vector.broadcast %12 : vector<1x128xf32> to vector<8x128xf32>
    %14 = arith.addf %11, %13 : vector<8x128xf32>
    %cst_11 = arith.constant 0.000000e+00 : f32
    %15 = vector.broadcast %cst_11 : f32 to vector<8x128xf32>
    %16 = arith.maximumf %14, %15 : vector<8x128xf32>
    %17 = arith.truncf %16 : vector<8x128xf32> to vector<8x128xbf16>
    %c0_12 = arith.constant 0 : index
    %c0_13 = arith.constant 0 : index
    %18 = vector.load %arg6[%c0_12, %c0_13] : memref<128x128xbf16, #tpu.memory_space<vmem>>, vector<128x128xbf16>
    %cst_14 = arith.constant dense<0.000000e+00> : vector<8x128xf32>
    %19 = tpu.matmul %17, %18, %cst_14 {dimension_numbers = #tpu.dot_dimension_numbers<[1], [0], [0], [1], [0, 0, 1, 1], [], []>} : vector<8x128xbf16>, vector<128x128xbf16>, vector<8x128xf32> -> vector<8x128xf32>
    %c0_15 = arith.constant 0 : index
    %c0_16 = arith.constant 0 : index
    %20 = vector.load %arg7[%c0_15, %c0_16] : memref<1x128xf32, #tpu.memory_space<vmem>>, vector<1x128xf32>
    %21 = vector.broadcast %20 : vector<1x128xf32> to vector<8x128xf32>
    %22 = arith.addf %19, %21 : vector<8x128xf32>
    %c0_17 = arith.constant 0 : index
    %c0_18 = arith.constant 0 : index
    %23 = vector.load %arg8[%c0_17, %c0_18] : memref<8x128xf32, #tpu.memory_space<vmem>>, vector<8x128xf32>
    tpu.vector_store %arg8[%c0_17, %c0_18], %22 {strides = array<i32>} : memref<8x128xf32, #tpu.memory_space<vmem>>, vector<8x128xf32>,
    return
  }
  func.func @transform_0(%arg0: i32) -> (i32, i32) {
    %c0_i32 = arith.constant 0 : i32
    %c0_i32_0 = arith.constant 0 : i32
    return %arg0, %c0_i32 : i32, i32
  }
  func.func @transform_1(%arg0: i32) -> (i32, i32) {
    %c0_i32 = arith.constant 0 : i32
    %c0_i32_0 = arith.constant 0 : i32
    %c0_i32_1 = arith.constant 0 : i32
    return %c0_i32, %c0_i32_0 : i32, i32
  }
  func.func @transform_2(%arg0: i32) -> (i32, i32) {
    %c0_i32 = arith.constant 0 : i32
    %c0_i32_0 = arith.constant 0 : i32
    %c0_i32_1 = arith.constant 0 : i32
    return %c0_i32, %c0_i32_0 : i32, i32
  }
  func.func @transform_3(%arg0: i32) -> (i32, i32) {
    %c0_i32 = arith.constant 0 : i32
    %c0_i32_0 = arith.constant 0 : i32
    %c0_i32_1 = arith.constant 0 : i32
    return %c0_i32, %c0_i32_0 : i32, i32
  }
  func.func @transform_4(%arg0: i32) -> (i32, i32) {
    %c0_i32 = arith.constant 0 : i32
    %c0_i32_0 = arith.constant 0 : i32
    %c0_i32_1 = arith.constant 0 : i32
    return %c0_i32, %c0_i32_0 : i32, i32
  }
  func.func @transform_5(%arg0: i32) -> (i32, i32) {
    %c0_i32 = arith.constant 0 : i32
    %c0_i32_0 = arith.constant 0 : i32
    %c0_i32_1 = arith.constant 0 : i32
    return %c0_i32, %c0_i32_0 : i32, i32
  }
  func.func @transform_6(%arg0: i32) -> (i32, i32) {
    %c0_i32 = arith.constant 0 : i32
    %c0_i32_0 = arith.constant 0 : i32
    %c0_i32_1 = arith.constant 0 : i32
    return %c0_i32, %c0_i32_0 : i32, i32
  }
  func.func @transform_7(%arg0: i32) -> (i32, i32) {
    %c0_i32 = arith.constant 0 : i32
    %c0_i32_0 = arith.constant 0 : i32
    return %arg0, %c0_i32 : i32, i32
  }
}

</mosaic_0001>

<bundles_post_ra>
// kernel: critic_forward.1
= control target key start
LH: loop header
LB: loop body
LE: loop exit
PB: predicated region body
PF: predicated region fallthrough
CT: control target
= control target key end

     0   :  { %12 = vsyncpa [#allocation3], 0  ;;  %s573_s0 = inlined_call_operand.hbm [shape: f32[8,32], index: 0, kind: input, shape index: {}]   ;;  %s574_s1 = inlined_call_operand.hbm [shape: bf16[32,128], index: 1, kind: input, shape index: {}]   ;;  %s575_s2 = inlined_call_operand.vmem [shape: f32[1,128], index: 2, kind: input, shape index: {}]   ;;  %s576_s3 = inlined_call_operand.hbm [shape: bf16[128,128], index: 3, kind: input, shape index: {}]   ;;  %s577_s4 = inlined_call_operand.vmem [shape: f32[1,128], index: 4, kind: input, shape index: {}]   ;;  %s578_s5 = inlined_call_operand.hbm [shape: bf16[128,128], index: 5, kind: input, shape index: {}]   ;;  %s579_s6 = inlined_call_operand.vmem [shape: f32[1,128], index: 6, kind: input, shape index: {}]   ;;  %s580_s7 = inlined_call_operand.vmem [shape: f32[8,128], index: 7, kind: output, shape index: {}]  }
   0x1   :  { %13 = vsyncpa [#allocation5], 0  ;;  %s30_s26 = sshll.u32 %s574_s1, 4  ;;  %s31_s26 = int_to_ptr.hbm [resolvable:$true] %s30_s26 }
   0x2   :  { %14 = vsyncpa [#allocation8], 0  ;;  %s503_s27 = smov [#allocation4]   ;;  %s20_s8 = sshll.u32 %s573_s0, 4  ;;  %s21_s8 = int_to_ptr.hbm [resolvable:$true] %s20_s8 }
   0x3   :  { %s32_s28 = sshll.u32 %s503_s27, 4  ;;  %s504_s9 = smov 64   ;;  %s33_s28 = int_to_ptr.vmem [resolvable:$true] %s32_s28 }
   0x4   :  { %s505_s10 = smov 4   ;;  %s506_s11 = smov [#allocation2]  }
   0x5   :  { %38 = dma.hbm_to_vmem [thread:$0]  %s31_s26, 256, %s33_s28, [#allocation5], %s504_s9, %s504_s9, %s505_s10  }
   0x6   :  { %s22_s12 = sshll.u32 %s506_s11, 4  ;;  %s45_s15 = sshll.u32 %s576_s3, 4  ;;  %s23_s12 = int_to_ptr.vmem [resolvable:$true] %s22_s12  ;;  %s46_s15 = int_to_ptr.hbm [resolvable:$true] %s45_s15 }
   0x7   :  { %25 = dma.hbm_to_vmem [thread:$0]  %s21_s8, 128, %s23_s12, [#allocation3]  }
   0x8   :  { %s60_s17 = sshll.u32 %s578_s5, 4  ;;  %s507_s18 = smov [#allocation6]   ;;  %s61_s17 = int_to_ptr.hbm [resolvable:$true] %s60_s17 }
   0x9   :  { %s47_s19 = sshll.u32 %s507_s18, 4  ;;  %s508_s0 = smov [#allocation7]   ;;  %s48_s19 = int_to_ptr.vmem [resolvable:$true] %s47_s19 }
   0xa   :  { %53 = dma.hbm_to_vmem [thread:$0]  %s46_s15, 1024, %s48_s19, [#allocation5], %s504_s9, %s504_s9, %s505_s10  }
   0xb   :  { %s62_s20 = sshll.u32 %s508_s0, 4  ;;  %s63_s20 = int_to_ptr.vmem [resolvable:$true] %s62_s20 }
   0xc   :  { %68 = dma.hbm_to_vmem [thread:$0]  %s61_s17, 1024, %s63_s20, [#allocation8], %s504_s9, %s504_s9, %s505_s10  }
   0xd   :  { %497 = dma.done.wait [#allocation3], 128  }
   0xe   :  { %498 = vsyncadd [#allocation3], 4294967168 }
   0xf   :  { %499 = dma.done.wait [#allocation5], 1280  }
  0x10   :  { %500 = vsyncadd [#allocation5], 4294966016 }
  0x11   :  { %501 = dma.done.wait [#allocation8], 1024  }
  0x12   :  { %502 = vsyncadd [#allocation8], 4294966272  ;;  %v375_v0 = vld [vmem:[#allocation4 + $0x8] sm:$0xff]  ;;  %v374_v2 = vld [vmem:[#allocation4] sm:$0xff]  ;;  %vm110_vm0 = vcmask 261120  }
  0x13   :  { %v383_v1 = vld [vmem:[#allocation6 + $0x38] sm:$0xff]  ;;  %120 = vmatpush.bf16.msra.mxu0 %v375_v0  ;;  %v88_v3 = vld [vmem:[#allocation2] sm:$0xff]  ;;  %v382_v4 = vld [vmem:[#allocation6 + $0x30] sm:$0xff] }
  0x14   :  { %197 = vmatpush.bf16.msra.mxu1 %v383_v1  ;;  %v89_v5 = vpack.c.bf16 %v88_v3, %v88_v3  ;;  %v381_v6 = vld [vmem:[#allocation6 + $0x28] sm:$0xff]  ;;  %v380_v7 = vld [vmem:[#allocation6 + $0x20] sm:$0xff]  ;;  %v379_v8 = vld [vmem:[#allocation6 + $0x18] sm:$0xff] }
  0x15   :  { %v378_v9 = vld [vmem:[#allocation6 + $0x10] sm:$0xff]  ;;  %v377_v10 = vld [vmem:[#allocation6 + $0x8] sm:$0xff]  ;;  %v376_v11 = vld [vmem:[#allocation6] sm:$0xff] }
  0x16   :  { %v391_v12 = vld [vmem:[#allocation7 + $0x38] sm:$0xff]  ;;  %v390_v13 = vld [vmem:[#allocation7 + $0x30] sm:$0xff]  ;;  %v389_v14 = vld [vmem:[#allocation7 + $0x28] sm:$0xff] }
  0x17   :  { %121 = vmatpush.bf16.msra.mxu0 %v374_v2  ;;  %280 = vmatpush.bf16.msra.mxu2 %v391_v12  ;;  %v388_v15 = vld [vmem:[#allocation7 + $0x20] sm:$0xff]  ;;  %v387_v16 = vld [vmem:[#allocation7 + $0x18] sm:$0xff]  ;;  %v386_v17 = vld [vmem:[#allocation7 + $0x10] sm:$0xff] }
  0x18   :  { %198 = vmatpush.bf16.msra.mxu1 %v382_v4  ;;  %v398_v18 = vld [vmem:[%s575_s2] ss:$0 sm:$0xff]  ;;  %v384_v25 = vld [vmem:[#allocation7] sm:$0xff] }
  0x19   :  { %v385_v24 = vld [vmem:[#allocation7 + $0x8] sm:$0xff] }
  0x1a   :  { %309 = vmatmul.msk.bf16.vlgmr.msra.gmra.mxu0 %vm110_vm0, %v89_v5  ;;  %v399_v26 = vld [vmem:[%s577_s4] ss:$0 sm:$0xff] }
  0x1b   :  { %281 = vmatpush.bf16.msra.mxu2 %v390_v13  ;;  %v400_v32 = vld [vmem:[%s579_s6] ss:$0 sm:$0xff] }
  0x1c   :  { %199 = vmatpush.bf16.msra.mxu1 %v381_v6 }
  0x1f   :  { %282 = vmatpush.bf16.msra.mxu2 %v389_v14 }
  0x20   :  { %200 = vmatpush.bf16.msra.mxu1 %v380_v7 }
  0x23   :  { %283 = vmatpush.bf16.msra.mxu2 %v388_v15 }
  0x24   :  { %201 = vmatpush.bf16.msra.mxu1 %v379_v8 }
  0x27   :  { %284 = vmatpush.bf16.msra.mxu2 %v387_v16 }
  0x28   :  { %202 = vmatpush.bf16.msra.mxu1 %v378_v9 }
  0x2b   :  { %285 = vmatpush.bf16.msra.mxu2 %v386_v17 }
  0x2c   :  { %203 = vmatpush.bf16.msra.mxu1 %v377_v10 }
  0x2f   :  { %286 = vmatpush.bf16.msra.mxu2 %v385_v24 }
  0x30   :  { %204 = vmatpush.bf16.msra.mxu1 %v376_v11 }
  0x33   :  { %287 = vmatpush.bf16.msra.mxu2 %v384_v25 }
  0x97   :  { %v123_v19 = vpop.f32.mrf.mxu0 }
  0x98   :  { %v124_v20 = vadd.f32 %v398_v18, %v123_v19 }
  0x9a   :  { %v127_v21 = vmax.f32 %v124_v20, 0.0 }
  0x9c   :  { %v128_v22 = vpack.c.bf16 %v127_v21, %v127_v21 }
  0x9e   :  { %205 = vmatmul.bf16.vlgmr.msra.gmra.mxu1 %v128_v22 }
  0x9f   :  { %v125_v23 = vpop.f32.mrf.mxu0 }
 0x11b   :  { %v206_v27 = vpop.f32.mrf.mxu1 }
 0x11c   :  { %v207_v28 = vadd.f32 %v399_v26, %v206_v27 }
 0x11e   :  { %v210_v29 = vmax.f32 %v207_v28, 0.0 }
 0x120   :  { %v211_v30 = vpack.c.bf16 %v210_v29, %v210_v29 }
 0x122   :  { %288 = vmatmul.bf16.vlgmr.msra.gmra.mxu2 %v211_v30 }
 0x123   :  { %v208_v31 = vpop.f32.mrf.mxu1 }
 0x1a5   :  { %v289_v33 = vpop.f32.mrf.mxu2 }
 0x1a6   :  { %v290_v34 = vadd.f32 %v400_v32, %v289_v33 }
 0x1a8   :  { %293 = vst [vmem:[%s580_s7] sm:$0xff] %v290_v34 }
 0x1ad   :  { %v291_v35 = vpop.f32.mrf.mxu2 }
 0x1ae   :  { %298 = vsyncpa [#allocation3], 1 }
 0x1af   :  { %299 = vsyncpa [#allocation5], 1 }
 0x1b0   :  { %300 = vsyncpa [#allocation8], 1 }

</bundles_post_ra>
